<compile_context>
chip_gen: v5e
topology: v5e:2x2
jax: 0.10.0
libtpu: 0.0.40
codegen_flags: <defaults>
</compile_context>

<pallas_src>
import functools

import jax
import jax.numpy as jnp
from jax.experimental import pallas as pl
from jax.experimental.pallas import tpu as pltpu

LEAKY_SLOPE = 0.01  # nn.LeakyReLU default negative_slope


def _round_up(n, m):
    return ((n + m - 1) // m) * m


def _deepset_decoder_kernel(x_ref, w1_ref, b1_ref, w2_ref, b2_ref, o_ref,
                            *, vpu_out: bool):
    # fc1 on the MXU (K = input_size can be large), f32 accumulation.
    x = x_ref[...]                                                    # (tb, F)
    h = jnp.dot(x, w1_ref[...],
                preferred_element_type=jnp.float32) + b1_ref[...]     # (tb, 10)
    # LeakyReLU: mul + max (2 VALU ops) instead of cmp + select.
    h = jnp.maximum(h, LEAKY_SLOPE * h)

    if vpu_out:
        # output_size == 1: w2_ref is (1, hidden). Broadcast-multiply on the
        # VPU and reduce over the lane axis (XLU) — avoids pushing a K=10,N=1
        # matmul through the MXU every grid step.
        y = jnp.sum(h * w2_ref[...], axis=-1, keepdims=True) + b2_ref[...]
    else:
        # General output_size: keep the MXU path, w2_ref is (hidden, out).
        y = jnp.dot(h, w2_ref[...],
                    preferred_element_type=jnp.float32) + b2_ref[...]
    o_ref[...] = y.astype(o_ref.dtype)


def deepset_decoder(x, w1, b1, w2, b2, *, target_block_bytes=4 << 20):
    """x: (B, input_size); w1: (input_size, 10); b1: (1, 10);
       w2: (10, output_size); b2: (1, output_size)."""
    B, F = x.shape
    H = w1.shape[1]
    out_size = w2.shape[1]
    vpu_out = (out_size == 1)

    # For the VPU output path the weight column is presented as a (1, hidden)
    # row so it broadcasts against h without any in-kernel reshape/transpose.
    w2_in = w2.T if vpu_out else w2

    # ---- VMEM-aware, F-adaptive batch-tile selection -----------------------
    F_pad = _round_up(max(F, 1), 128)            # lane padding of the x block
    out_pad = _round_up(max(out_size, 1), 128)   # lane padding of the output
    H_pad = _round_up(H, 128)                    # hidden=10 pads to 128 lanes

    # Generation-aware VMEM budget: ~75% of physical capacity
    # (~48 MiB on v7x, ~96 MiB on v5e/v6e).  Conservative fallback 48 MiB.
    try:
        vmem_capacity = int(pltpu.get_tpu_info().vmem_capacity_bytes)
    except Exception:
        vmem_capacity = 64 << 20
    vmem_cap = (vmem_capacity * 3) // 4

    # Resident (and conservatively assumed double-buffered) weights/biases,
    # with real sublane/lane padding, plus headroom for compiler scratch.
    w2r, w2c = w2_in.shape
    fixed_bytes = 2 * 4 * (_round_up(F, 8) * H_pad          # w1
                           + 8 * H_pad                      # b1
                           + _round_up(w2r, 8) * _round_up(w2c, 128)  # w2
                           + 8 * out_pad)                   # b2
    fixed_bytes += 2 << 20

    # Per-row VMEM cost of the streamed tensors (double-buffered x and out,
    # both lane-padded).
    per_row_bytes = 2 * 4 * (F_pad + out_pad)

    avail = max(vmem_cap - fixed_bytes, 8 * per_row_bytes)
    tb_vmem = max(((avail // per_row_bytes) // 8) * 8, 8)

    # Target an x block of ~target_block_bytes (lane-padded) so DMA time
    # dominates the fixed per-step overhead.
    tb_target = max(_round_up(max(target_block_bytes // (4 * F_pad), 1), 8), 8)

    tb = min(tb_target, tb_vmem, _round_up(B, 8))
    if B >= 16:
        # Keep at least 2 grid steps so v7x's two TensorCores both get work.
        tb = min(tb, _round_up(pl.cdiv(B, 2), 8))
    tb = max(tb, 8)

    grid = (pl.cdiv(B, tb),)

    # ---- Advisory cost for XLA's scheduler (true traffic, no padding) ------
    flops = 2 * B * (F * H + H * out_size)
    bytes_accessed = 4 * (B * F + F * H + H + H * out_size + out_size
                          + B * out_size)
    cost = pl.CostEstimate(flops=flops, transcendentals=0,
                           bytes_accessed=bytes_accessed)

    vmem_bytes = int(min(max(fixed_bytes + tb * per_row_bytes, 16 << 20),
                         vmem_cap))

    kernel = functools.partial(_deepset_decoder_kernel, vpu_out=vpu_out)

    return pl.pallas_call(
        kernel,
        out_shape=jax.ShapeDtypeStruct((B, out_size), jnp.float32),
        grid=grid,
        in_specs=[
            pl.BlockSpec((tb, F), lambda i: (i, 0)),          # x: streamed
            pl.BlockSpec((F, H), lambda i: (0, 0)),           # w1: resident
            pl.BlockSpec((1, H), lambda i: (0, 0)),           # b1: resident
            pl.BlockSpec(w2_in.shape, lambda i: (0, 0)),      # w2: resident
            pl.BlockSpec((1, out_size), lambda i: (0, 0)),    # b2: resident
        ],
        out_specs=pl.BlockSpec((tb, out_size), lambda i: (i, 0)),
        compiler_params=pltpu.CompilerParams(
            dimension_semantics=("parallel",),
            vmem_limit_bytes=vmem_bytes),
        cost_estimate=cost,
    )(x, w1, b1, w2_in, b2)


def init_params(key, input_size, hidden=10, output_size=1):
    """Deterministic PyTorch-style (uniform +/- 1/sqrt(fan_in)) init.

    PyTorch stores Linear weights as (out, in); we store the transpose
    (in, out) so the kernel does x @ W directly.
    """
    k1, k2, k3, k4 = jax.random.split(key, 4)
    bound1 = 1.0 / jnp.sqrt(input_size)
    bound2 = 1.0 / jnp.sqrt(hidden)
    w1 = jax.random.uniform(k1, (input_size, hidden), jnp.float32,
                            -bound1, bound1)
    b1 = jax.random.uniform(k2, (1, hidden), jnp.float32, -bound1, bound1)
    w2 = jax.random.uniform(k3, (hidden, output_size), jnp.float32,
                            -bound2, bound2)
    b2 = jax.random.uniform(k4, (1, output_size), jnp.float32,
                            -bound2, bound2)
    return w1, b1, w2, b2


def reference(x, w1, b1, w2, b2):
    h = x @ w1 + b1
    h = jnp.where(h >= 0, h, LEAKY_SLOPE * h)
    return h @ w2 + b2


if __name__ == "__main__":
    key = jax.random.PRNGKey(0)
    kx, kp = jax.random.split(key)

    batch = 8
    input_size = 32
    output_size = 1

    x = jax.random.normal(kx, (batch, input_size), jnp.float32)
    w1, b1, w2, b2 = init_params(kp, input_size, 10, output_size)

    y = deepset_decoder(x, w1, b1, w2, b2)
    y = jax.block_until_ready(y)

    y_ref = reference(x, w1, b1, w2, b2)
    assert y.shape == (batch, output_size)
    assert jnp.allclose(y, y_ref, atol=1e-5, rtol=1e-5)

    # Also exercise a non-tile-aligned batch (partial trailing block path).
    x2 = jax.random.normal(kx, (37, input_size), jnp.float32)
    y2 = jax.block_until_ready(deepset_decoder(x2, w1, b1, w2, b2))
    assert y2.shape == (37, output_size)
    assert jnp.allclose(y2, reference(x2, w1, b1, w2, b2), atol=1e-5, rtol=1e-5)

    print("KERNEL_OK")
</pallas_src>

<mosaic_0001>
module attributes {stable_mosaic.version = 11 : i64} {
  func.func @_deepset_decoder_kernel(%arg0: i32, %arg1: memref<8x32xf32, #tpu.memory_space<vmem>>, %arg2: memref<32x10xf32, #tpu.memory_space<vmem>>, %arg3: memref<1x10xf32, #tpu.memory_space<vmem>>, %arg4: memref<1x10xf32, #tpu.memory_space<vmem>>, %arg5: memref<1x1xf32, #tpu.memory_space<vmem>>, %arg6: memref<8x1xf32, #tpu.memory_space<vmem>>) attributes {dimension_semantics = [#tpu.dimension_semantics<parallel>], iteration_bounds = array<i64: 1>, scalar_prefetch = 0 : i64, scratch_operands = 0 : i64, tpu.core_type = #tpu.core_type<tc>, window_params = [{transform_indices = @transform_0, window_bounds = array<i64: 8, 32>}, {pipeline_mode = #tpu.pipeline_mode<synchronous>, transform_indices = @transform_1, window_bounds = array<i64: 32, 10>}, {pipeline_mode = #tpu.pipeline_mode<synchronous>, transform_indices = @transform_2, window_bounds = array<i64: 1, 10>}, {pipeline_mode = #tpu.pipeline_mode<synchronous>, transform_indices = @transform_3, window_bounds = array<i64: 1, 10>}, {pipeline_mode = #tpu.pipeline_mode<synchronous>, transform_indices = @transform_4, window_bounds = array<i64: 1, 1>}, {transform_indices = @transform_5, window_bounds = array<i64: 8, 1>}]} {
    %c0 = arith.constant 0 : index
    %c0_0 = arith.constant 0 : index
    %0 = vector.load %arg1[%c0, %c0_0] : memref<8x32xf32, #tpu.memory_space<vmem>>, vector<8x32xf32>
    %c0_1 = arith.constant 0 : index
    %c0_2 = arith.constant 0 : index
    %1 = vector.load %arg2[%c0_1, %c0_2] : memref<32x10xf32, #tpu.memory_space<vmem>>, vector<32x10xf32>
    %cst = arith.constant dense<0.000000e+00> : vector<8x10xf32>
    %2 = tpu.matmul %0, %1, %cst {dimension_numbers = #tpu.dot_dimension_numbers<[1], [0], [0], [1], [0, 0, 1, 1], [], []>} : vector<8x32xf32>, vector<32x10xf32>, vector<8x10xf32> -> vector<8x10xf32>
    %c0_3 = arith.constant 0 : index
    %c0_4 = arith.constant 0 : index
    %3 = vector.load %arg3[%c0_3, %c0_4] : memref<1x10xf32, #tpu.memory_space<vmem>>, vector<1x10xf32>
    %4 = vector.broadcast %3 : vector<1x10xf32> to vector<8x10xf32>
    %5 = arith.addf %2, %4 : vector<8x10xf32>
    %cst_5 = arith.constant 0.00999999977 : f32
    %6 = vector.broadcast %cst_5 : f32 to vector<8x10xf32>
    %7 = arith.mulf %6, %5 : vector<8x10xf32>
    %8 = arith.maximumf %5, %7 : vector<8x10xf32>
    %c0_6 = arith.constant 0 : index
    %c0_7 = arith.constant 0 : index
    %9 = vector.load %arg4[%c0_6, %c0_7] : memref<1x10xf32, #tpu.memory_space<vmem>>, vector<1x10xf32>
    %10 = vector.broadcast %9 : vector<1x10xf32> to vector<8x10xf32>
    %11 = arith.mulf %8, %10 : vector<8x10xf32>
    %cst_8 = arith.constant dense<0.000000e+00> : vector<8xf32>
    %12 = vector.multi_reduction <add>, %11, %cst_8 [1] : vector<8x10xf32> to vector<8xf32>
    %13 = vector.shape_cast %12 : vector<8xf32> to vector<8x1xf32>
    %c0_9 = arith.constant 0 : index
    %c0_10 = arith.constant 0 : index
    %14 = vector.load %arg5[%c0_9, %c0_10] : memref<1x1xf32, #tpu.memory_space<vmem>>, vector<1x1xf32>
    %15 = vector.broadcast %14 : vector<1x1xf32> to vector<8x1xf32>
    %16 = arith.addf %13, %15 : vector<8x1xf32>
    %c0_11 = arith.constant 0 : index
    %c0_12 = arith.constant 0 : index
    %17 = vector.load %arg6[%c0_11, %c0_12] : memref<8x1xf32, #tpu.memory_space<vmem>>, vector<8x1xf32>
    tpu.vector_store %arg6[%c0_11, %c0_12], %16 {strides = array<i32>} : memref<8x1xf32, #tpu.memory_space<vmem>>, vector<8x1xf32>,
    return
  }
  func.func @transform_0(%arg0: i32) -> (i32, i32) {
    %c0_i32 = arith.constant 0 : i32
    %c0_i32_0 = arith.constant 0 : i32
    return %arg0, %c0_i32 : i32, i32
  }
  func.func @transform_1(%arg0: i32) -> (i32, i32) {
    %c0_i32 = arith.constant 0 : i32
    %c0_i32_0 = arith.constant 0 : i32
    %c0_i32_1 = arith.constant 0 : i32
    return %c0_i32, %c0_i32_0 : i32, i32
  }
  func.func @transform_2(%arg0: i32) -> (i32, i32) {
    %c0_i32 = arith.constant 0 : i32
    %c0_i32_0 = arith.constant 0 : i32
    %c0_i32_1 = arith.constant 0 : i32
    return %c0_i32, %c0_i32_0 : i32, i32
  }
  func.func @transform_3(%arg0: i32) -> (i32, i32) {
    %c0_i32 = arith.constant 0 : i32
    %c0_i32_0 = arith.constant 0 : i32
    %c0_i32_1 = arith.constant 0 : i32
    return %c0_i32, %c0_i32_0 : i32, i32
  }
  func.func @transform_4(%arg0: i32) -> (i32, i32) {
    %c0_i32 = arith.constant 0 : i32
    %c0_i32_0 = arith.constant 0 : i32
    %c0_i32_1 = arith.constant 0 : i32
    return %c0_i32, %c0_i32_0 : i32, i32
  }
  func.func @transform_5(%arg0: i32) -> (i32, i32) {
    %c0_i32 = arith.constant 0 : i32
    %c0_i32_0 = arith.constant 0 : i32
    return %arg0, %c0_i32 : i32, i32
  }
}

</mosaic_0001>

<bundles_post_ra>
// kernel: tpu_custom_call.1
= control target key start
LH: loop header
LB: loop body
LE: loop exit
PB: predicated region body
PF: predicated region fallthrough
CT: control target
= control target key end

     0   :  { %vm31_vm0 = vcmask 261120   ;;  %vm62_vm1 = vcmask 80896   ;;  %vm71_vm2 = vcmask 7168   ;;  %s138_s1 = inlined_call_operand.vmem [shape: f32[32,10], index: 1, kind: input, shape index: {}]   ;;  %s139_s2 = inlined_call_operand.vmem [shape: f32[1,10], index: 2, kind: input, shape index: {}]   ;;  %s140_s0 = inlined_call_operand.vmem [shape: f32[8,32], index: 0, kind: input, shape index: {}]   ;;  %s141_s3 = inlined_call_operand.vmem [shape: f32[1,10], index: 3, kind: input, shape index: {}]   ;;  %s142_s4 = inlined_call_operand.<no memory space> [shape: f32[1,1], index: 4, kind: input, shape index: {}]   ;;  %s143_s5 = inlined_call_operand.vmem [shape: f32[8,1], index: 5, kind: output, shape index: {}]  }
   0x1   :  { %v26_v0 = vld [vmem:[%s138_s1 + $0x18] sm:$0xff]  ;;  %v25_v1 = vld [vmem:[%s138_s1 + $0x10] sm:$0xff]  ;;  %v24_v2 = vld [vmem:[%s138_s1 + $0x8] sm:$0xff]  ;;  %v10_v5 = vstv %s142_s4 }
   0x2   :  { %47 = vmatpush.msra.mxu0 %v26_v0  ;;  %v23_v3 = vld [vmem:[%s138_s1] sm:$0xff]  ;;  %11 = vst [vmem:[#allocation2] sm:$0x1] %v10_v5 }
   0x3   :  { %v22_v4 = vld [vmem:[%s140_s0] sm:$0xff] }
   0x4   :  { %48 = vmatpush.msra.mxu0 %v25_v1  ;;  %v78_v6 = vld [vmem:[%s139_s2] ss:$0 sm:$0xff] }
   0x5   :  { %v79_v10 = vld [vmem:[%s141_s3] ss:$0 sm:$0xff] }
   0x6   :  { %49 = vmatpush.msra.mxu0 %v24_v2 }
   0x8   :  { %50 = vmatpush.msra.mxu0 %v23_v3 }
   0x9   :  { %77 = vmatmul.msk.f32.vlgmr.msra.gmra.mxu0 %vm31_vm0, %v22_v4  ;;  %v80_v14 = vld [vmem:[#allocation2] ss:$0 sm:$0xff] }
  0x86   :  { %v52_v7 = vpop.f32.mrf.mxu0 }
  0x87   :  { %v53_v8 = vadd.f32 %v78_v6, %v52_v7 }
  0x89   :  { %v55_v9 = vmul.f32 0.01, %v53_v8 }
  0x8b   :  { %v56_v11 = vmax.f32 %v53_v8, %v55_v9 }
  0x8d   :  { %v61_v12 = vmul.f32 %v79_v10, %v56_v11 }
  0x8f   :  { %v63_v13 = vsel %vm62_vm1, %v61_v12, 0.0 }
  0x90   :  { %64 = vadd.xlane.f32.xlu0 %v63_v13 }
 0x103   :  { %v65_v15 = vpop.xlane.xlu0 %64 }
 0x104   :  { %v70_v16 = vadd.f32 %v80_v14, %v65_v15 }
 0x106   :  { %72 = vst.msk [vmem:[%s143_s5] sm:$0xff] %vm71_vm2, %v70_v16 }

</bundles_post_ra>
